<compile_context>
chip_gen: v7x
topology: tpu7x:2x2x1
jax: 0.10.0
libtpu: 0.0.40
codegen_flags: <defaults>
</compile_context>

<pallas_src>
import jax
import jax.numpy as jnp
from jax.experimental import pallas as pl
from jax.experimental.pallas import tpu as pltpu

INPUT_DIM = 310
HIDDEN = 64
LOW_RANK = 32
NUM_CLASS = 3


def _round_up(x, m):
    return (x + m - 1) // m * m


def _default_min_steps():
    # v7x has 2 TensorCores: keep >=2 grid steps on the "parallel" kernels so
    # both cores get work.  On single-TC v5e/v6e the largest tile wins.
    try:
        kind = jax.devices()[0].device_kind.lower()
    except Exception:
        return 1
    return 2 if "v7" in kind else 1


def _pick_tile(rows, pref, min_steps=1):
    """Largest multiple of 8 that divides round_up(rows, 8) and is <= pref.

    Choosing a divisor means padding is never more than 7 rows (no full-slab
    HBM copy just to append pad rows).  If possible, prefer a tile giving at
    least `min_steps` grid steps (v7x megacore)."""
    rows8 = _round_up(rows, 8)
    n = rows8 // 8
    divs = [d for d in range(1, min(n, max(1, pref // 8)) + 1) if n % d == 0]
    good = [d for d in divs if n // d >= min_steps]
    d = max(good) if good else max(divs)
    return 8 * d


def _pad_rows(x, rows_p):
    rows = x.shape[0]
    if rows_p == rows:
        return x
    return jnp.pad(x, ((0, rows_p - rows),) + ((0, 0),) * (x.ndim - 1))


def _feature_block(x, w1_ref, b1_ref, w2_ref, b2_ref, compute_dtype):
    """Linear(310->64) + ReLU + Linear(64->64) + ReLU on one batch tile."""
    x = x.astype(compute_dtype)
    h = jnp.dot(x, w1_ref[...].astype(compute_dtype),
                preferred_element_type=jnp.float32) + b1_ref[...]
    h = jnp.maximum(h, 0.0)
    h = jnp.dot(h.astype(compute_dtype), w2_ref[...].astype(compute_dtype),
                preferred_element_type=jnp.float32) + b2_ref[...]
    return jnp.maximum(h, 0.0)                        # (tb, HIDDEN) f32


def _softmax_rows(preds):
    m = jnp.max(preds, axis=1, keepdims=True)
    e = jnp.exp(preds - m)
    return e / jnp.sum(e, axis=1, keepdims=True)


# ---------------------------------------------------------------------------
# Kernel A: source pass = FeatureExtractor + update_P (fused)
#   feat  = relu(relu(x@w1+b1)@w2+b2)                  (written per tile)
#   P.T   = (feat.T @ label) / (label.sum(0) + 1)      (VMEM accumulators)
#   W_eff = U.T @ (V @ P.T)                            (finalize, (64, C))
# Batch axis is a reduction -> "arbitrary" (safe on megacore).
# ---------------------------------------------------------------------------
def _make_source_kernel(compute_dtype):
    def kernel(x_ref, lab_ref, w1_ref, b1_ref, w2_ref, b2_ref, u_ref, v_ref,
               feat_ref, weff_ref, pt_ref, num_acc, cnt_acc):
        step = pl.program_id(0)

        @pl.when(step == 0)
        def _():
            num_acc[...] = jnp.zeros_like(num_acc)
            cnt_acc[...] = jnp.zeros_like(cnt_acc)

        feat = _feature_block(x_ref[...], w1_ref, b1_ref, w2_ref, b2_ref,
                              compute_dtype)                       # (tb, 64)
        feat_ref[...] = feat

        lab = lab_ref[...]                                         # (tb, C)
        # feat.T @ label (contract over batch) -> (64, C); pad rows have
        # zero labels so they contribute nothing to either accumulator.
        num_acc[...] += jax.lax.dot_general(
            feat, lab, (((0,), (0,)), ((), ())),
            preferred_element_type=jnp.float32)
        cnt_acc[...] += jnp.sum(lab, axis=0, keepdims=True)        # (1, C)

        @pl.when(step == pl.num_programs(0) - 1)
        def _():
            pt = num_acc[...] / (cnt_acc[...] + 1.0)               # (64, C) == P.T
            pt_ref[...] = pt
            sm = jnp.dot(v_ref[...], pt,
                         preferred_element_type=jnp.float32)       # (R, C) == stored_mat
            weff_ref[...] = jax.lax.dot_general(                   # U.T @ stored_mat
                u_ref[...], sm, (((0,), (0,)), ((), ())),
                preferred_element_type=jnp.float32)                # (64, C)
    return kernel


def source_pass(source, source_label, w1, b1, w2, b2, U, V, *,
                tb=1024, compute_dtype=jnp.float32):
    B, D = source.shape
    tb = _pick_tile(B, tb)                 # reduction axis: one TC, biggest tile
    Bp = _round_up(B, tb)                  # == round_up(B, 8): <=7 pad rows
    source = _pad_rows(source, Bp)
    source_label = _pad_rows(source_label, Bp)   # zero labels -> no contribution

    feat, w_eff, pt = pl.pallas_call(
        _make_source_kernel(compute_dtype),
        out_shape=(
            jax.ShapeDtypeStruct((Bp, HIDDEN), jnp.float32),        # source features
            jax.ShapeDtypeStruct((HIDDEN, NUM_CLASS), jnp.float32), # W_eff
            jax.ShapeDtypeStruct((HIDDEN, NUM_CLASS), jnp.float32), # P.T
        ),
        grid=(Bp // tb,),
        in_specs=[
            pl.BlockSpec((tb, D), lambda i: (i, 0)),
            pl.BlockSpec((tb, NUM_CLASS), lambda i: (i, 0)),
            pl.BlockSpec((D, HIDDEN), lambda i: (0, 0)),
            pl.BlockSpec((1, HIDDEN), lambda i: (0, 0)),
            pl.BlockSpec((HIDDEN, HIDDEN), lambda i: (0, 0)),
            pl.BlockSpec((1, HIDDEN), lambda i: (0, 0)),
            pl.BlockSpec((LOW_RANK, HIDDEN), lambda i: (0, 0)),
            pl.BlockSpec((LOW_RANK, HIDDEN), lambda i: (0, 0)),
        ],
        out_specs=(
            pl.BlockSpec((tb, HIDDEN), lambda i: (i, 0)),
            pl.BlockSpec((HIDDEN, NUM_CLASS), lambda i: (0, 0)),
            pl.BlockSpec((HIDDEN, NUM_CLASS), lambda i: (0, 0)),
        ),
        scratch_shapes=[
            pltpu.VMEM((HIDDEN, NUM_CLASS), jnp.float32),
            pltpu.VMEM((1, NUM_CLASS), jnp.float32),
        ],
        compiler_params=pltpu.CompilerParams(
            dimension_semantics=("arbitrary",)),
    )(source, source_label, w1, b1, w2, b2, U, V)
    return feat, w_eff, pt           # feat is row-padded to Bp (multiple of 8)


# ---------------------------------------------------------------------------
# Kernel B: target pass = FeatureExtractor + classifier (fused)
#   logits = softmax(feat @ W_eff)   -> (rows, C) f32, 12 B/row output
# ---------------------------------------------------------------------------
def _make_target_kernel(compute_dtype):
    def kernel(x_ref, w1_ref, b1_ref, w2_ref, b2_ref, weff_ref, o_ref):
        feat = _feature_block(x_ref[...], w1_ref, b1_ref, w2_ref, b2_ref,
                              compute_dtype)
        preds = jnp.dot(feat.astype(compute_dtype),
                        weff_ref[...].astype(compute_dtype),
                        preferred_element_type=jnp.float32)        # (tb, C)
        o_ref[...] = _softmax_rows(preds)
    return kernel


def target_pass(target, w1, b1, w2, b2, w_eff, *,
                tb=1024, compute_dtype=jnp.float32):
    rows, D = target.shape
    tb = _pick_tile(rows, tb, _default_min_steps())
    rows_p = _round_up(rows, tb)
    target = _pad_rows(target, rows_p)
    out = pl.pallas_call(
        _make_target_kernel(compute_dtype),
        out_shape=jax.ShapeDtypeStruct((rows_p, NUM_CLASS), jnp.float32),
        grid=(rows_p // tb,),
        in_specs=[
            pl.BlockSpec((tb, D), lambda i: (i, 0)),
            pl.BlockSpec((D, HIDDEN), lambda i: (0, 0)),
            pl.BlockSpec((1, HIDDEN), lambda i: (0, 0)),
            pl.BlockSpec((HIDDEN, HIDDEN), lambda i: (0, 0)),
            pl.BlockSpec((1, HIDDEN), lambda i: (0, 0)),
            pl.BlockSpec((HIDDEN, NUM_CLASS), lambda i: (0, 0)),
        ],
        out_specs=pl.BlockSpec((tb, NUM_CLASS), lambda i: (i, 0)),
        compiler_params=pltpu.CompilerParams(
            dimension_semantics=("parallel",)),
    )(target, w1, b1, w2, b2, w_eff)
    return out[:rows] if rows_p != rows else out


# ---------------------------------------------------------------------------
# Kernel C: classifier on precomputed (source) features
# ---------------------------------------------------------------------------
def _make_clf_kernel(compute_dtype):
    def kernel(feat_ref, weff_ref, o_ref):
        preds = jnp.dot(feat_ref[...].astype(compute_dtype),
                        weff_ref[...].astype(compute_dtype),
                        preferred_element_type=jnp.float32)        # (tb, C)
        o_ref[...] = _softmax_rows(preds)
    return kernel


def classifier_forward(feature, w_eff, *, tb=1024, compute_dtype=jnp.float32):
    rows, _ = feature.shape
    tb = _pick_tile(rows, tb, _default_min_steps())
    rows_p = _round_up(rows, tb)
    feature = _pad_rows(feature, rows_p)     # no-op: rows already 8-aligned
    out = pl.pallas_call(
        _make_clf_kernel(compute_dtype),
        out_shape=jax.ShapeDtypeStruct((rows_p, NUM_CLASS), jnp.float32),
        grid=(rows_p // tb,),
        in_specs=[
            pl.BlockSpec((tb, HIDDEN), lambda i: (i, 0)),
            pl.BlockSpec((HIDDEN, NUM_CLASS), lambda i: (0, 0)),
        ],
        out_specs=pl.BlockSpec((tb, NUM_CLASS), lambda i: (i, 0)),
        compiler_params=pltpu.CompilerParams(
            dimension_semantics=("parallel",)),
    )(feature, w_eff)
    return out


# ---------------------------------------------------------------------------
# PRPL.forward (the reproducible part)
# ---------------------------------------------------------------------------
def prpl_forward(params, source, target, source_label, *,
                 compute_dtype=jnp.float32):
    w1, b1, w2, b2, U, V = params
    B = source.shape[0]

    # Kernel A: source features + update_P (P.T and the folded W_eff)
    src_feat_p, W_eff, Pt = source_pass(
        source, source_label, w1, b1, w2, b2, U, V, compute_dtype=compute_dtype)
    P = Pt.T                                                      # (C, 64)

    # P_loss = ||P.T P - I_64||_F via the tiny CxC gram (wrapper-side)
    G = Pt.T @ Pt                                                 # (C, C)
    P_loss = jnp.sqrt(jnp.maximum(
        jnp.sum(G * G) - 2.0 * jnp.sum(Pt * Pt) + float(HIDDEN), 0.0))

    # Kernel C: source logits from the (row-padded) features of kernel A;
    # padded rows give garbage logits that are sliced off the tiny output.
    source_logits = classifier_forward(
        src_feat_p, W_eff, compute_dtype=compute_dtype)[:B]

    # Kernel B: target features + classifier fused (no HBM round-trip of the
    # target features).
    target_logits = target_pass(
        target, w1, b1, w2, b2, W_eff, compute_dtype=compute_dtype)

    # TODO(synk): PairLoss (clf_loss, cluster_loss) and TransferLoss ('dann'
    # domain classifier, trans_loss, plus the 0.005*randn feature noise) class
    # definitions are not provided in the reference module, so those losses
    # are not reproduced here.
    return source_logits, target_logits, P_loss, P


# ---------------------------------------------------------------------------
# Pure-JAX reference for sanity checking
# ---------------------------------------------------------------------------
def ref_forward(params, source, target, source_label):
    w1, b1, w2, b2, U, V = params

    def feat(x):
        h = jnp.maximum(x @ w1 + b1, 0.0)
        return jnp.maximum(h @ w2 + b2, 0.0)

    sf, tf = feat(source), feat(target)
    col = source_label.sum(axis=0)
    P = (source_label.T @ sf) / (col + 1.0)[:, None]
    sm = V @ P.T

    def clf(f):
        return jax.nn.softmax((f @ U.T) @ sm, axis=1)

    P_loss = jnp.sqrt(jnp.sum((P.T @ P - jnp.eye(HIDDEN)) ** 2))
    return clf(sf), clf(tf), P_loss, P


if __name__ == "__main__":
    key = jax.random.PRNGKey(0)
    k1, k2, k3, k4, k5, k6, ks, kt, kl = jax.random.split(key, 9)

    # deterministic parameter init (shapes per FeatureExtractor/LabelClassifier)
    s1 = 1.0 / jnp.sqrt(INPUT_DIM)
    s2 = 1.0 / jnp.sqrt(HIDDEN)
    w1 = jax.random.uniform(k1, (INPUT_DIM, HIDDEN), jnp.float32, -s1, s1)
    b1 = jax.random.uniform(k2, (1, HIDDEN), jnp.float32, -s1, s1)
    w2 = jax.random.uniform(k3, (HIDDEN, HIDDEN), jnp.float32, -s2, s2)
    b2 = jax.random.uniform(k4, (1, HIDDEN), jnp.float32, -s2, s2)
    U = jax.random.normal(k5, (LOW_RANK, HIDDEN), jnp.float32)
    V = jax.random.normal(k6, (LOW_RANK, HIDDEN), jnp.float32)
    params = (w1, b1, w2, b2, U, V)

    # deterministic example inputs (small batch)
    B = 8
    source = jax.random.normal(ks, (B, INPUT_DIM), jnp.float32)
    target = jax.random.normal(kt, (B, INPUT_DIM), jnp.float32)
    source_label = jax.nn.one_hot(
        jax.random.randint(kl, (B,), 0, NUM_CLASS), NUM_CLASS, dtype=jnp.float32)

    out = jax.block_until_ready(prpl_forward(params, source, target, source_label))
    ref = ref_forward(params, source, target, source_label)

    for o, r in zip(out, ref):
        assert o.shape == r.shape, (o.shape, r.shape)
        assert bool(jnp.all(jnp.isfinite(o)))
        assert bool(jnp.allclose(o, r, rtol=2e-2, atol=2e-2)), (o, r)

    print("KERNEL_OK")
</pallas_src>

<mosaic_0001>
module attributes {stable_mosaic.version = 11 : i64} {
  func.func @kernel(%arg0: i32, %arg1: memref<8x310xf32, #tpu.memory_space<vmem>>, %arg2: memref<8x3xf32, #tpu.memory_space<vmem>>, %arg3: memref<310x64xf32, #tpu.memory_space<vmem>>, %arg4: memref<1x64xf32, #tpu.memory_space<vmem>>, %arg5: memref<64x64xf32, #tpu.memory_space<vmem>>, %arg6: memref<1x64xf32, #tpu.memory_space<vmem>>, %arg7: memref<32x64xf32, #tpu.memory_space<vmem>>, %arg8: memref<32x64xf32, #tpu.memory_space<vmem>>, %arg9: memref<8x64xf32, #tpu.memory_space<vmem>>, %arg10: memref<64x3xf32, #tpu.memory_space<vmem>>, %arg11: memref<64x3xf32, #tpu.memory_space<vmem>>, %arg12: memref<64x3xf32, #tpu.memory_space<vmem>>, %arg13: memref<1x3xf32, #tpu.memory_space<vmem>>) attributes {dimension_semantics = [#tpu.dimension_semantics<arbitrary>], iteration_bounds = array<i64: 1>, scalar_prefetch = 0 : i64, scratch_operands = 2 : i64, tpu.core_type = #tpu.core_type<tc>, window_params = [{transform_indices = @transform_0, window_bounds = array<i64: 8, 310>}, {transform_indices = @transform_1, window_bounds = array<i64: 8, 3>}, {pipeline_mode = #tpu.pipeline_mode<synchronous>, transform_indices = @transform_2, window_bounds = array<i64: 310, 64>}, {pipeline_mode = #tpu.pipeline_mode<synchronous>, transform_indices = @transform_3, window_bounds = array<i64: 1, 64>}, {pipeline_mode = #tpu.pipeline_mode<synchronous>, transform_indices = @transform_4, window_bounds = array<i64: 64, 64>}, {pipeline_mode = #tpu.pipeline_mode<synchronous>, transform_indices = @transform_5, window_bounds = array<i64: 1, 64>}, {pipeline_mode = #tpu.pipeline_mode<synchronous>, transform_indices = @transform_6, window_bounds = array<i64: 32, 64>}, {pipeline_mode = #tpu.pipeline_mode<synchronous>, transform_indices = @transform_7, window_bounds = array<i64: 32, 64>}, {transform_indices = @transform_8, window_bounds = array<i64: 8, 64>}, {pipeline_mode = #tpu.pipeline_mode<synchronous>, transform_indices = @transform_9, window_bounds = array<i64: 64, 3>}, {pipeline_mode = #tpu.pipeline_mode<synchronous>, transform_indices = @transform_10, window_bounds = array<i64: 64, 3>}]} {
    %c0_i32 = arith.constant 0 : i32
    %0 = arith.cmpi eq, %arg0, %c0_i32 : i32
    %1 = arith.extui %0 : i1 to i32
    %c0_i32_0 = arith.constant 0 : i32
    %2 = arith.cmpi ne, %1, %c0_i32_0 : i32
    scf.if %2 {
      %cst_29 = arith.constant 0.000000e+00 : f32
      %32 = vector.broadcast %cst_29 : f32 to vector<64x3xf32>
      %c0_30 = arith.constant 0 : index
      %c0_31 = arith.constant 0 : index
      %33 = vector.load %arg12[%c0_30, %c0_31] : memref<64x3xf32, #tpu.memory_space<vmem>>, vector<64x3xf32>
      tpu.vector_store %arg12[%c0_30, %c0_31], %32 {strides = array<i32>} : memref<64x3xf32, #tpu.memory_space<vmem>>, vector<64x3xf32>,
      %cst_32 = arith.constant 0.000000e+00 : f32
      %34 = vector.broadcast %cst_32 : f32 to vector<1x3xf32>
      %c0_33 = arith.constant 0 : index
      %c0_34 = arith.constant 0 : index
      %35 = vector.load %arg13[%c0_33, %c0_34] : memref<1x3xf32, #tpu.memory_space<vmem>>, vector<1x3xf32>
      tpu.vector_store %arg13[%c0_33, %c0_34], %34 {strides = array<i32>} : memref<1x3xf32, #tpu.memory_space<vmem>>, vector<1x3xf32>,
    } else {
    }
    %c0 = arith.constant 0 : index
    %c0_1 = arith.constant 0 : index
    %3 = vector.load %arg1[%c0, %c0_1] : memref<8x310xf32, #tpu.memory_space<vmem>>, vector<8x310xf32>
    %c0_2 = arith.constant 0 : index
    %c0_3 = arith.constant 0 : index
    %4 = vector.load %arg3[%c0_2, %c0_3] : memref<310x64xf32, #tpu.memory_space<vmem>>, vector<310x64xf32>
    %cst = arith.constant dense<0.000000e+00> : vector<8x64xf32>
    %5 = tpu.matmul %3, %4, %cst {dimension_numbers = #tpu.dot_dimension_numbers<[1], [0], [0], [1], [0, 0, 1, 1], [], []>} : vector<8x310xf32>, vector<310x64xf32>, vector<8x64xf32> -> vector<8x64xf32>
    %c0_4 = arith.constant 0 : index
    %c0_5 = arith.constant 0 : index
    %6 = vector.load %arg4[%c0_4, %c0_5] : memref<1x64xf32, #tpu.memory_space<vmem>>, vector<1x64xf32>
    %7 = vector.broadcast %6 : vector<1x64xf32> to vector<8x64xf32>
    %8 = arith.addf %5, %7 : vector<8x64xf32>
    %cst_6 = arith.constant 0.000000e+00 : f32
    %9 = vector.broadcast %cst_6 : f32 to vector<8x64xf32>
    %10 = arith.maximumf %8, %9 : vector<8x64xf32>
    %c0_7 = arith.constant 0 : index
    %c0_8 = arith.constant 0 : index
    %11 = vector.load %arg5[%c0_7, %c0_8] : memref<64x64xf32, #tpu.memory_space<vmem>>, vector<64x64xf32>
    %cst_9 = arith.constant dense<0.000000e+00> : vector<8x64xf32>
    %12 = tpu.matmul %10, %11, %cst_9 {dimension_numbers = #tpu.dot_dimension_numbers<[1], [0], [0], [1], [0, 0, 1, 1], [], []>} : vector<8x64xf32>, vector<64x64xf32>, vector<8x64xf32> -> vector<8x64xf32>
    %c0_10 = arith.constant 0 : index
    %c0_11 = arith.constant 0 : index
    %13 = vector.load %arg6[%c0_10, %c0_11] : memref<1x64xf32, #tpu.memory_space<vmem>>, vector<1x64xf32>
    %14 = vector.broadcast %13 : vector<1x64xf32> to vector<8x64xf32>
    %15 = arith.addf %12, %14 : vector<8x64xf32>
    %cst_12 = arith.constant 0.000000e+00 : f32
    %16 = vector.broadcast %cst_12 : f32 to vector<8x64xf32>
    %17 = arith.maximumf %15, %16 : vector<8x64xf32>
    %c0_13 = arith.constant 0 : index
    %c0_14 = arith.constant 0 : index
    %18 = vector.load %arg9[%c0_13, %c0_14] : memref<8x64xf32, #tpu.memory_space<vmem>>, vector<8x64xf32>
    tpu.vector_store %arg9[%c0_13, %c0_14], %17 {strides = array<i32>} : memref<8x64xf32, #tpu.memory_space<vmem>>, vector<8x64xf32>,
    %c0_15 = arith.constant 0 : index
    %c0_16 = arith.constant 0 : index
    %19 = vector.load %arg2[%c0_15, %c0_16] : memref<8x3xf32, #tpu.memory_space<vmem>>, vector<8x3xf32>
    %c0_17 = arith.constant 0 : index
    %c0_18 = arith.constant 0 : index
    %20 = vector.load %arg12[%c0_17, %c0_18] : memref<64x3xf32, #tpu.memory_space<vmem>>, vector<64x3xf32>
    %cst_19 = arith.constant dense<0.000000e+00> : vector<64x3xf32>
    %21 = tpu.matmul %17, %19, %cst_19 {dimension_numbers = #tpu.dot_dimension_numbers<[0], [0], [1], [1], [0, 1, 1, 1], [], []>} : vector<8x64xf32>, vector<8x3xf32>, vector<64x3xf32> -> vector<64x3xf32>
    %22 = arith.addf %20, %21 : vector<64x3xf32>
    %c0_20 = arith.constant 0 : index
    %c0_21 = arith.constant 0 : index
    %23 = vector.load %arg12[%c0_20, %c0_21] : memref<64x3xf32, #tpu.memory_space<vmem>>, vector<64x3xf32>
    tpu.vector_store %arg12[%c0_20, %c0_21], %22 {strides = array<i32>} : memref<64x3xf32, #tpu.memory_space<vmem>>, vector<64x3xf32>,
    %c0_22 = arith.constant 0 : index
    %c0_23 = arith.constant 0 : index
    %24 = vector.load %arg13[%c0_22, %c0_23] : memref<1x3xf32, #tpu.memory_space<vmem>>, vector<1x3xf32>
    %cst_24 = arith.constant dense<0.000000e+00> : vector<3xf32>
    %25 = vector.multi_reduction <add>, %19, %cst_24 [0] : vector<8x3xf32> to vector<3xf32>
    %26 = vector.shape_cast %25 : vector<3xf32> to vector<1x3xf32>
    %27 = arith.addf %24, %26 : vector<1x3xf32>
    %c0_25 = arith.constant 0 : index
    %c0_26 = arith.constant 0 : index
    %28 = vector.load %arg13[%c0_25, %c0_26] : memref<1x3xf32, #tpu.memory_space<vmem>>, vector<1x3xf32>
    tpu.vector_store %arg13[%c0_25, %c0_26], %27 {strides = array<i32>} : memref<1x3xf32, #tpu.memory_space<vmem>>, vector<1x3xf32>,
    %c0_i32_27 = arith.constant 0 : i32
    %29 = arith.cmpi eq, %arg0, %c0_i32_27 : i32
    %30 = arith.extui %29 : i1 to i32
    %c0_i32_28 = arith.constant 0 : i32
    %31 = arith.cmpi ne, %30, %c0_i32_28 : i32
    scf.if %31 {
      %c0_29 = arith.constant 0 : index
      %c0_30 = arith.constant 0 : index
      %32 = vector.load %arg12[%c0_29, %c0_30] : memref<64x3xf32, #tpu.memory_space<vmem>>, vector<64x3xf32>
      %c0_31 = arith.constant 0 : index
      %c0_32 = arith.constant 0 : index
      %33 = vector.load %arg13[%c0_31, %c0_32] : memref<1x3xf32, #tpu.memory_space<vmem>>, vector<1x3xf32>
      %cst_33 = arith.constant 1.000000e+00 : f32
      %34 = vector.broadcast %cst_33 : f32 to vector<1x3xf32>
      %35 = arith.addf %33, %34 : vector<1x3xf32>
      %36 = vector.broadcast %35 : vector<1x3xf32> to vector<64x3xf32>
      %37 = arith.divf %32, %36 : vector<64x3xf32>
      %c0_34 = arith.constant 0 : index
      %c0_35 = arith.constant 0 : index
      %38 = vector.load %arg11[%c0_34, %c0_35] : memref<64x3xf32, #tpu.memory_space<vmem>>, vector<64x3xf32>
      tpu.vector_store %arg11[%c0_34, %c0_35], %37 {strides = array<i32>} : memref<64x3xf32, #tpu.memory_space<vmem>>, vector<64x3xf32>,
      %c0_36 = arith.constant 0 : index
      %c0_37 = arith.constant 0 : index
      %39 = vector.load %arg8[%c0_36, %c0_37] : memref<32x64xf32, #tpu.memory_space<vmem>>, vector<32x64xf32>
      %cst_38 = arith.constant dense<0.000000e+00> : vector<32x3xf32>
      %40 = tpu.matmul %39, %37, %cst_38 {dimension_numbers = #tpu.dot_dimension_numbers<[1], [0], [0], [1], [0, 0, 1, 1], [], []>} : vector<32x64xf32>, vector<64x3xf32>, vector<32x3xf32> -> vector<32x3xf32>
      %c0_39 = arith.constant 0 : index
      %c0_40 = arith.constant 0 : index
      %41 = vector.load %arg7[%c0_39, %c0_40] : memref<32x64xf32, #tpu.memory_space<vmem>>, vector<32x64xf32>
      %cst_41 = arith.constant dense<0.000000e+00> : vector<64x3xf32>
      %42 = tpu.matmul %41, %40, %cst_41 {dimension_numbers = #tpu.dot_dimension_numbers<[0], [0], [1], [1], [0, 1, 1, 1], [], []>} : vector<32x64xf32>, vector<32x3xf32>, vector<64x3xf32> -> vector<64x3xf32>
      %c0_42 = arith.constant 0 : index
      %c0_43 = arith.constant 0 : index
      %43 = vector.load %arg10[%c0_42, %c0_43] : memref<64x3xf32, #tpu.memory_space<vmem>>, vector<64x3xf32>
      tpu.vector_store %arg10[%c0_42, %c0_43], %42 {strides = array<i32>} : memref<64x3xf32, #tpu.memory_space<vmem>>, vector<64x3xf32>,
    } else {
    }
    return
  }
  func.func @transform_0(%arg0: i32) -> (i32, i32) {
    %c0_i32 = arith.constant 0 : i32
    %c0_i32_0 = arith.constant 0 : i32
    return %arg0, %c0_i32 : i32, i32
  }
  func.func @transform_1(%arg0: i32) -> (i32, i32) {
    %c0_i32 = arith.constant 0 : i32
    %c0_i32_0 = arith.constant 0 : i32
    return %arg0, %c0_i32 : i32, i32
  }
  func.func @transform_2(%arg0: i32) -> (i32, i32) {
    %c0_i32 = arith.constant 0 : i32
    %c0_i32_0 = arith.constant 0 : i32
    %c0_i32_1 = arith.constant 0 : i32
    return %c0_i32, %c0_i32_0 : i32, i32
  }
  func.func @transform_3(%arg0: i32) -> (i32, i32) {
    %c0_i32 = arith.constant 0 : i32
    %c0_i32_0 = arith.constant 0 : i32
    %c0_i32_1 = arith.constant 0 : i32
    return %c0_i32, %c0_i32_0 : i32, i32
  }
  func.func @transform_4(%arg0: i32) -> (i32, i32) {
    %c0_i32 = arith.constant 0 : i32
    %c0_i32_0 = arith.constant 0 : i32
    %c0_i32_1 = arith.constant 0 : i32
    return %c0_i32, %c0_i32_0 : i32, i32
  }
  func.func @transform_5(%arg0: i32) -> (i32, i32) {
    %c0_i32 = arith.constant 0 : i32
    %c0_i32_0 = arith.constant 0 : i32
    %c0_i32_1 = arith.constant 0 : i32
    return %c0_i32, %c0_i32_0 : i32, i32
  }
  func.func @transform_6(%arg0: i32) -> (i32, i32) {
    %c0_i32 = arith.constant 0 : i32
    %c0_i32_0 = arith.constant 0 : i32
    %c0_i32_1 = arith.constant 0 : i32
    return %c0_i32, %c0_i32_0 : i32, i32
  }
  func.func @transform_7(%arg0: i32) -> (i32, i32) {
    %c0_i32 = arith.constant 0 : i32
    %c0_i32_0 = arith.constant 0 : i32
    %c0_i32_1 = arith.constant 0 : i32
    return %c0_i32, %c0_i32_0 : i32, i32
  }
  func.func @transform_8(%arg0: i32) -> (i32, i32) {
    %c0_i32 = arith.constant 0 : i32
    %c0_i32_0 = arith.constant 0 : i32
    return %arg0, %c0_i32 : i32, i32
  }
  func.func @transform_9(%arg0: i32) -> (i32, i32) {
    %c0_i32 = arith.constant 0 : i32
    %c0_i32_0 = arith.constant 0 : i32
    %c0_i32_1 = arith.constant 0 : i32
    return %c0_i32, %c0_i32_0 : i32, i32
  }
  func.func @transform_10(%arg0: i32) -> (i32, i32) {
    %c0_i32 = arith.constant 0 : i32
    %c0_i32_0 = arith.constant 0 : i32
    %c0_i32_1 = arith.constant 0 : i32
    return %c0_i32, %c0_i32_0 : i32, i32
  }
}

</mosaic_0001>

<bundles_post_ra>
// kernel: tpu_custom_call.1
= control target key start
LH: loop header
LB: loop body
LE: loop exit
PB: predicated region body
PF: predicated region fallthrough
CT: control target
= control target key end

     0   :  { %v1178_v7 = vmov 0.0|0.0   ;;  %vm1179_vm0 = vmmov 0   ;;  %v1180_v13 = vmov 0.0   ;;  %s1558_s0 = inlined_call_operand.vmem [shape: f32[8,310], index: 0, kind: input, shape index: {}]   ;;  %s1559_s1 = inlined_call_operand.vmem [shape: f32[8,3], index: 1, kind: input, shape index: {}]   ;;  %s1560_s2 = inlined_call_operand.vmem [shape: f32[310,64], index: 2, kind: input, shape index: {}]   ;;  %s1561_s3 = inlined_call_operand.vmem [shape: f32[1,64], index: 3, kind: input, shape index: {}]   ;;  %s1562_s4 = inlined_call_operand.vmem [shape: f32[64,64], index: 4, kind: input, shape index: {}]   ;;  %s1563_s5 = inlined_call_operand.vmem [shape: f32[1,64], index: 5, kind: input, shape index: {}]   ;;  %s1564_s6 = inlined_call_operand.vmem [shape: f32[32,64], index: 6, kind: input, shape index: {}]   ;;  %s1565_s7 = inlined_call_operand.vmem [shape: f32[32,64], index: 7, kind: input, shape index: {}]   ;;  %s1566_s8 = inlined_call_operand.hbm [shape: f32[8,64], index: 8, kind: output, shape index: {0}]   ;;  %s1567_s9 = inlined_call_operand.vmem [shape: f32[64,3], index: 9, kind: output, shape index: {1}]   ;;  %s1568_s10 = inlined_call_operand.vmem [shape: f32[64,3], index: 10, kind: output, shape index: {2}]  }
   0x1   :  { %v67_v0 = vld [vmem:[%s1560_s2 + $0x80] sm:$0xff]  ;;  %v68_v1 = vld [vmem:[%s1560_s2 + $0x88] sm:$0xff]  ;;  %v69_v5 = vld [vmem:[%s1560_s2 + $0x90] sm:$0xff]  ;;  %1103 = vmatprep.subr.bf16.mxu1 %v1178_v7  ;;  %993 = vmatprep.mubr.msk.f32.mxu1 %vm1179_vm0, %v1180_v13 }
   0x2   :  { %v51_v2 = vld [vmem:[%s1560_s2] sm:$0xff]  ;;  %v1071_v3 = vpack.c.bf16 %v68_v1, %v67_v0  ;;  %v52_v4 = vld [vmem:[%s1560_s2 + $0x8] sm:$0xff]  ;;  %v70_v6 = vld [vmem:[%s1560_s2 + $0x98] sm:$0xff] }
   0x3   :  { %v1073_v8 = vpack.c.bf16 %v52_v4, %v51_v2  ;;  %v1075_v9 = vpack.c.bf16 %v70_v6, %v69_v5  ;;  %v53_v10 = vld [vmem:[%s1560_s2 + $0x10] sm:$0xff]  ;;  %v54_v11 = vld [vmem:[%s1560_s2 + $0x18] sm:$0xff]  ;;  %v71_v12 = vld [vmem:[%s1560_s2 + $0xa0] sm:$0xff] }
   0x4   :  { %1072 = vmatprep.subr.bf16.mxu0 %v1071_v3  ;;  %v72_v14 = vld [vmem:[%s1560_s2 + $0xa8] sm:$0xff]  ;;  %v1077_v15 = vpack.c.bf16 %v54_v11, %v53_v10  ;;  %v55_v17 = vld [vmem:[%s1560_s2 + $0x20] sm:$0xff]  ;;  %v73_v19 = vld [vmem:[%s1560_s2 + $0xb0] sm:$0xff] }
   0x5   :  { %1074 = vmatpush3.bf16.msra.mxu0 %v1073_v8  ;;  %v1079_v16 = vpack.c.bf16 %v72_v14, %v71_v12  ;;  %v56_v18 = vld [vmem:[%s1560_s2 + $0x28] sm:$0xff]  ;;  %v74_v20 = vld [vmem:[%s1560_s2 + $0xb8] sm:$0xff]  ;;  %v83_v22 = vld [vmem:[%s1560_s2 + $0x100] sm:$0xff] }
   0x6   :  { %1076 = vmatprep.subr.bf16.mxu0 %v1075_v9  ;;  %v1081_v21 = vpack.c.bf16 %v56_v18, %v55_v17  ;;  %v84_v23 = vld [vmem:[%s1560_s2 + $0x108] sm:$0xff]  ;;  %v1083_v24 = vpack.c.bf16 %v74_v20, %v73_v19  ;;  %v57_v25 = vld [vmem:[%s1560_s2 + $0x30] sm:$0xff]  ;;  %v58_v26 = vld [vmem:[%s1560_s2 + $0x38] sm:$0xff] }
   0x7   :  { %v75_v27 = vld [vmem:[%s1560_s2 + $0xc0] sm:$0xff]  ;;  %v1104_v28 = vpack.c.bf16 %v84_v23, %v83_v22  ;;  %v76_v29 = vld [vmem:[%s1560_s2 + $0xc8] sm:$0xff]  ;;  %v85_v30 = vld [vmem:[%s1560_s2 + $0x110] sm:$0xff]  ;;  %v1085_v33 = vpack.c.bf16 %v58_v26, %v57_v25 }
   0x8   :  { %v86_v31 = vld [vmem:[%s1560_s2 + $0x118] sm:$0xff]  ;;  %v49_v34 = vld [vmem:[%s1558_s0 + $0x8] sm:$0xff]  ;;  %v87_v35 = vld [vmem:[%s1560_s2 + $0x120] sm:$0xff]  ;;  %v1087_v37 = vpack.c.bf16 %v76_v29, %v75_v27 }
   0x9   :  { %1078 = vmatpush3.bf16.msra.mxu0 %v1077_v15  ;;  %1105 = vmatpush3.bf16.msra.mxu1 %v1104_v28  ;;  %v1107_v32 = vpack.c.bf16 %v86_v31, %v85_v30  ;;  %v88_v36 = vld [vmem:[%s1560_s2 + $0x128] sm:$0xff]  ;;  %v59_v38 = vld [vmem:[%s1560_s2 + $0x40] sm:$0xff]  ;;  %v77_v40 = vld [vmem:[%s1560_s2 + $0xd0] sm:$0xff] }
   0xa   :  { %1080 = vmatprep.subr.bf16.mxu0 %v1079_v16  ;;  %1106 = vmatprep.subr.bf16.mxu1 %v1178_v7  ;;  %v60_v39 = vld [vmem:[%s1560_s2 + $0x48] sm:$0xff]  ;;  %v78_v41 = vld [vmem:[%s1560_s2 + $0xd8] sm:$0xff]  ;;  %v1110_v42 = vpack.c.bf16 %v88_v36, %v87_v35 }
   0xb   :  { %169 = vmatprep.mubr.f32.mxu0 %v49_v34 }
   0xd   :  { %1082 = vmatpush3.bf16.msra.mxu0 %v1081_v21  ;;  %1108 = vmatpush3.bf16.msra.mxu1 %v1107_v32 }
   0xe   :  { %1084 = vmatprep.subr.bf16.mxu0 %v1083_v24 }
   0xf   :  { %16 = vsyncpa [#allocation5], 0  ;;  %v1089_v43 = vpack.c.bf16 %v60_v39, %v59_v38  ;;  %1109 = vmatprep.subr.bf16.mxu1 %v1178_v7  ;;  %v1091_v44 = vpack.c.bf16 %v78_v41, %v77_v40  ;;  %v61_v45 = vld [vmem:[%s1560_s2 + $0x50] sm:$0xff]  ;;  %v62_v46 = vld [vmem:[%s1560_s2 + $0x58] sm:$0xff]  ;;  %vm101_vm1 = vcmask 1045504   ;;  %vm97_vm2 = vcmask 441344  }
  0x10   :  { %v79_v47 = vld [vmem:[%s1560_s2 + $0xe0] sm:$0xff]  ;;  %v80_v48 = vld [vmem:[%s1560_s2 + $0xe8] sm:$0xff]  ;;  %v1093_v51 = vpack.c.bf16 %v62_v46, %v61_v45  ;;  %v89_v52 = vld [vmem:[%s1560_s2 + $0x130] sm:$0x3f]  ;;  %vm261_vm3 = vcmask 523264   ;;  %vm37_vm4 = vcmask 23552  }
  0x11   :  { %1086 = vmatpush3.bf16.msra.mxu0 %v1085_v33  ;;  %1111 = vmatpush3.bf16.msra.mxu1 %v1110_v42  ;;  %v246_v49 = vld [vmem:[%s1562_s4] sm:$0xff]  ;;  %v247_v50 = vld [vmem:[%s1562_s4 + $0x8] sm:$0xff]  ;;  %v1095_v53 = vpack.c.bf16 %v80_v48, %v79_v47  ;;  %v50_v56 = vld [vmem:[%s1558_s0 + $0x10] sm:$0xff]  ;;  %vm46_vm5 = vcmask 16384   ;;  %38 = vst.msk [vmem:[#allocation2] sm:$0xff] %vm37_vm4, %v1180_v13  ;;  %vm378_vm6 = vcmask 64512   ;;  %v550_v48 = vlaneseq }
  0x12   :  { %1088 = vmatprep.subr.bf16.mxu0 %v1087_v37  ;;  %991 = vmatprep.subr.mxu1 %v1180_v13  ;;  %v63_v54 = vld [vmem:[%s1560_s2 + $0x60] sm:$0xff]  ;;  %v64_v55 = vld [vmem:[%s1560_s2 + $0x68] sm:$0xff]  ;;  %v81_v57 = vld [vmem:[%s1560_s2 + $0xf0] sm:$0xff]  ;;  %v1113_v59 = vpack.c.bf16 %v247_v50, %v246_v49  ;;  %47 = vst.msk [vmem:[#allocation3] sm:$0x1] %vm46_vm5, %v1180_v13  ;;  %vm709_vm7 = vcmask 261120  }
  0x13   :  { %v82_v58 = vld [vmem:[%s1560_s2 + $0xf8] sm:$0xff]  ;;  %v248_v60 = vld [vmem:[%s1562_s4 + $0x10] sm:$0xff]  ;;  %v1097_v62 = vpack.c.bf16 %v64_v55, %v63_v54  ;;  %v48_v4 = vld [vmem:[%s1558_s0] sm:$0xff]  ;;  %39 = vst.msk [vmem:[#allocation2 + $0x8] sm:$0xff] %vm37_vm4, %v1180_v13  ;;  %v551_v49 = vshrl.u32 %v550_v48, 7 }
  0x14   :  { %v249_v61 = vld [vmem:[%s1562_s4 + $0x18] sm:$0xff]  ;;  %v1099_v63 = vpack.c.bf16 %v82_v58, %v81_v57  ;;  %v65_v0 = vld [vmem:[%s1560_s2 + $0x70] sm:$0xff]  ;;  %v250_v5 = vld [vmem:[%s1562_s4 + $0x20] sm:$0xff]  ;;  %40 = vst.msk [vmem:[#allocation2 + $0x10] sm:$0xff] %vm37_vm4, %v1180_v13 }
  0x15   :  { %1090 = vmatpush3.bf16.msra.mxu0 %v1089_v43  ;;  %992 = vmatpush3.msk.msra.mxu1 %vm101_vm1, %v89_v52  ;;  %v66_v1 = vld [vmem:[%s1560_s2 + $0x78] sm:$0xff]  ;;  %v1116_v2 = vpack.c.bf16 %v249_v61, %v248_v60  ;;  %v251_v6 = vld [vmem:[%s1562_s4 + $0x28] sm:$0xff]  ;;  %v252_v9 = vld [vmem:[%s1562_s4 + $0x30] sm:$0xff]  ;;  %41 = vst.msk [vmem:[#allocation2 + $0x18] sm:$0xff] %vm37_vm4, %v1180_v13  ;;  %v552_v52 = vsub.s32 0, %v551_v49 }
  0x16   :  { %1092 = vmatprep.subr.bf16.mxu0 %v1091_v44  ;;  %994 = vmatmul.mubr.msk.f32.vlgmr.msra.gmra.mrb[0].mxu1 %vm97_vm2, %v50_v56  ;;  %v1101_v3 = vpack.c.bf16 %v66_v1, %v65_v0  ;;  %v1119_v8 = vpack.c.bf16 %v251_v6, %v250_v5  ;;  %v253_v10 = vld [vmem:[%s1562_s4 + $0x38] sm:$0xff]  ;;  %v869_v17 = vld [vmem:[%s1561_s3] ss:$0 sm:$0xff]  ;;  %42 = vst.msk [vmem:[#allocation2 + $0x20] sm:$0xff] %vm37_vm4, %v1180_v13  ;;  %43 = vst.msk [vmem:[#allocation2 + $0x28] sm:$0xff] %vm37_vm4, %v1180_v13 }
  0x17   :  { %1112 = vmatprep.subr.bf16.mxu1 %v1178_v7  ;;  %1012 = vmatprep.mubr.msk.f32.mxu1 %vm1179_vm0, %v1180_v13  ;;  %v1122_v11 = vpack.c.bf16 %v253_v10, %v252_v9  ;;  %v872_v21 = vld [vmem:[%s1563_s5] ss:$0 sm:$0xff]  ;;  %44 = vst.msk [vmem:[#allocation2 + $0x30] sm:$0xff] %vm37_vm4, %v1180_v13  ;;  %45 = vst.msk [vmem:[#allocation2 + $0x38] sm:$0xff] %vm37_vm4, %v1180_v13  ;;  %v674_v45 = vld [vmem:[%s1564_s6 + $0x8] sm:$0xff] }
  0x18   :  { %1114 = vmatpush3.bf16.msra.mxu1 %v1113_v59  ;;  %v337_v26 = vld [vmem:[%s1559_s1] sm:$0xff]  ;;  %v675_v46 = vld [vmem:[%s1564_s6 + $0x10] sm:$0xff]  ;;  %v676_v47 = vld [vmem:[%s1564_s6 + $0x18] sm:$0xff] }
  0x19   :  { %1094 = vmatpush3.bf16.msra.mxu0 %v1093_v51  ;;  %1115 = vmatprep.subr.bf16.mxu1 %v1178_v7  ;;  %v526_v27 = vsel %vm37_vm4, %v337_v26, 0.0  ;;  %v525_v33 = vld [vmem:[#allocation3] sm:$0x1] }
  0x1a   :  { %1096 = vmatprep.subr.bf16.mxu0 %v1095_v53  ;;  %v527_v28 = vrot.slane %v526_v27, 4  ;;  %v572_v43 = vld [vmem:[%s1565_s7] sm:$0xff]  ;;  %v339_v54 = vld [vmem:[#allocation2 + $0x8] sm:$0xff] }
  0x1b   :  { %v673_v44 = vld [vmem:[%s1564_s6] sm:$0xff]  ;;  %v340_v61 = vld [vmem:[#allocation2 + $0x10] sm:$0xff] }
  0x1c   :  { %1117 = vmatpush3.bf16.msra.mxu1 %v1116_v2  ;;  %v528_v29 = vadd.f32 %v527_v28, %v526_v27  ;;  %v338_v55 = vld [vmem:[#allocation2] sm:$0xff]  ;;  %v341_v60 = vld [vmem:[#allocation2 + $0x18] sm:$0xff] }
  0x1d   :  { %1098 = vmatpush3.bf16.msra.mxu0 %v1097_v62  ;;  %1118 = vmatprep.subr.bf16.mxu1 %v1178_v7  ;;  %v342_v10 = vld [vmem:[#allocation2 + $0x20] sm:$0xff] }
  0x1e   :  { %1100 = vmatprep.subr.bf16.mxu0 %v1099_v63  ;;  %v529_v30 = vrot.slane %v528_v29, 2 }
  0x20   :  { %1120 = vmatpush3.bf16.msra.mxu1 %v1119_v8  ;;  %v530_v31 = vadd.f32 %v529_v30, %v528_v29  ;;  %v343_v8 = vld [vmem:[#allocation2 + $0x28] sm:$0xff] }
  0x21   :  { %1102 = vmatpush3.bf16.msra.mxu0 %v1101_v3  ;;  %1121 = vmatprep.subr.bf16.mxu1 %v1178_v7 }
  0x22   :  { %1015 = vmatprep.subr.mxu0 %v337_v26  ;;  %v531_v32 = vrot.slane %v530_v31, 1 }
  0x24   :  { %170 = vmatmul.mubr.f32.vlgmr.msra.gmra.mrb[0].mxu0 %v48_v4  ;;  %1123 = vmatpush3.bf16.msra.mxu1 %v1122_v11  ;;  %v532_v34 = vadd.f32 %v531_v32, %v530_v31 }
  0x25   :  { %1016 = vmatpush3.msra.mxu0 %v337_v26 }
  0x26   :  { %v533_v35 = vadd.f32 %v532_v34, %v525_v33 }
  0x28   :  { %535 = vst.msk [vmem:[#allocation3] sm:$0x1] %vm46_vm5, %v533_v35 }
  0x2f   :  { %v547_v50 = vld [vmem:[#allocation3] sm:$0x1] }
  0x30   :  { %v548_v51 = vadd.f32 1.0, %v547_v50 }
  0x32   :  { %v553_v53 = vrot.slane %v548_v51, %v552_v52 }
  0x34   :  { %1152 = vrcp.f32 %v553_v53 }
  0x3e   :  { %v1153_v62 = vpop.eup %1152 }
  0xe9   :  { %v241_v12 = vpop.f32.mrb[0].mxu1 }
  0xea   :  { %v995_v14 = vpop.f32.mrb[1].mxu1 }
  0xf7   :  { %v926_v15 = vpop.f32.mrb[0].mxu0 }
  0xf8   :  { %v927_v16 = vpop.f32.mrb[1].mxu0 }
  0xf9   :  { %v928_v18 = vadd.f32 %v927_v16, %v926_v15 }
  0xfb   :  { %v172_v7 = vadd.f32 %v928_v18, %v869_v17 }
  0xfd   :  { %v242_v19 = vadd.f32 %v241_v12, %v172_v7 }
  0xff   :  { %v245_v20 = vmax.f32 %v242_v19, 0.0  ;;  %v345_v19 = vld [vmem:[#allocation2 + $0x38] sm:$0xff] }
 0x101   :  { %1013 = vmatmul.mubr.msk.f32.vlgmr.msra.gmra.mrb[2].mxu1 %vm261_vm3, %v245_v20 }
 0x1d4   :  { %v331_v22 = vpop.f32.mrb[2].mxu1 }
 0x1d5   :  { %v332_v23 = vadd.f32 %v872_v21, %v331_v22  ;;  %v1014_v24 = vpop.f32.mrb[3].mxu1  ;;  %v344_v21 = vld [vmem:[#allocation2 + $0x30] sm:$0xff] }
 0x1d7   :  { %v335_v25 = vmax.f32 %v332_v23, 0.0 }
 0x1d9   :  { %336 = vst.msk [vmem:[#allocation4] sm:$0xff] %vm261_vm3, %v335_v25  ;;  %346 = vxpose.xlu0.b32.start.end [1/1] (short) (narrow) %v335_v25, 64 }
 0x1f6   :  { %677 = vxpose.xlu0.b32.start [1/4] (short) (narrow) %v673_v44, 64 }
 0x1fa   :  { %678 = vxpose.xlu0.b32.cont [2/4] (short) (narrow) %v674_v45, 64 }
 0x1fe   :  { %679 = vxpose.xlu0.b32.cont [3/4] (short) (narrow) %v675_v46, 64 }
 0x202   :  { %680 = vxpose.xlu0.b32.end [4/4] (short) (narrow) %v676_v47, 64 }
 0x259   :  { %v362_v36 = vpop.trf.xlu0 }
 0x25a   :  { %1017 = vmatprep.mubr.msk.f32.mxu0 %vm378_vm6, %v362_v36  ;;  %v573_v36 = vld [vmem:[%s1565_s7 + $0x8] sm:$0xff] }
 0x25d   :  { %v363_v37 = vpop.trf.xlu0 }
 0x25e   :  { %1018 = vmatmul.mubr.msk.f32.vlgmr.msra.gmra.mrb[2].mxu0 %vm378_vm6, %v363_v37  ;;  %v574_v37 = vld [vmem:[%s1565_s7 + $0x10] sm:$0xff] }
 0x261   :  { %v364_v38 = vpop.trf.xlu0 }
 0x262   :  { %1020 = vmatprep.mubr.msk.f32.mxu0 %vm378_vm6, %v364_v38  ;;  %v575_v38 = vld [vmem:[%s1565_s7 + $0x18] sm:$0xff]  ;;  %s1181_s7 = smov [#allocation4]  }
 0x265   :  { %v365_v13 = vpop.trf.xlu0 }
 0x266   :  { %1021 = vmatmul.mubr.msk.f32.gmra.mrb[4].mxu0 %vm378_vm6, %v365_v13 }
 0x269   :  { %v366_v39 = vpop.trf.xlu0 }
 0x26a   :  { %1023 = vmatprep.mubr.msk.f32.mxu0 %vm378_vm6, %v366_v39 }
 0x26d   :  { %v367_v40 = vpop.trf.xlu0 }
 0x26e   :  { %1024 = vmatmul.mubr.msk.f32.gmra.mrb[6].mxu0 %vm378_vm6, %v367_v40 }
 0x271   :  { %v368_v41 = vpop.trf.xlu0 }
 0x272   :  { %1026 = vmatprep.mubr.msk.f32.mxu0 %vm378_vm6, %v368_v41 }
 0x275   :  { %v369_v42 = vpop.trf.xlu0 }
 0x276   :  { %1027 = vmatmul.mubr.msk.f32.gmra.mrb[8].mxu0 %vm378_vm6, %v369_v42 }
 0x277   :  { %1045 = vmatprep.mubr.msk.f32.mxu0 %vm261_vm3, %v572_v43 }
 0x279   :  { %v693_v13 = vpop.trf.xlu0 }
 0x27a   :  { %1059 = vmatprep.mubr.msk.f32.mxu1 %vm709_vm7, %v693_v13 }
 0x27d   :  { %v694_v39 = vpop.trf.xlu0 }
 0x281   :  { %v695_v40 = vpop.trf.xlu0 }
 0x285   :  { %v696_v41 = vpop.trf.xlu0 }
 0x289   :  { %v697_v45 = vpop.trf.xlu0 }
 0x28d   :  { %v698_v49 = vpop.trf.xlu0 }
 0x291   :  { %v699_v50 = vpop.trf.xlu0 }
 0x295   :  { %v700_v51 = vpop.trf.xlu0 }
 0x331   :  { %v1019_v56 = vpop.f32.mrb[2].mxu0 }
 0x332   :  { %v509_v57 = vadd.f32 %v1019_v56, %v339_v54  ;;  %v469_v58 = vpop.f32.mrb[3].mxu0 }
 0x333   :  { %v508_v59 = vadd.f32 %v469_v58, %v338_v55 }
 0x334   :  { %518 = vst.msk [vmem:[#allocation2 + $0x8] sm:$0xff] %vm37_vm4, %v509_v57 }
 0x335   :  { %517 = vst.msk [vmem:[#allocation2] sm:$0xff] %vm37_vm4, %v508_v59 }
 0x339   :  { %v1022_v63 = vpop.f32.mrb[4].mxu0 }
 0x33a   :  { %v511_v0 = vadd.f32 %v1022_v63, %v341_v60  ;;  %v479_v1 = vpop.f32.mrb[5].mxu0 }
 0x33b   :  { %v510_v2 = vadd.f32 %v479_v1, %v340_v61  ;;  %v540_v3 = vld [vmem:[#allocation2 + $0x8] sm:$0xff] }
 0x33c   :  { %520 = vst.msk [vmem:[#allocation2 + $0x18] sm:$0xff] %vm37_vm4, %v511_v0  ;;  %v539_v4 = vld [vmem:[#allocation2] sm:$0xff]  ;;  %v557_v5 = vmul.f32 %v1153_v62, %v540_v3 }
 0x33d   :  { %519 = vst.msk [vmem:[#allocation2 + $0x10] sm:$0xff] %vm37_vm4, %v510_v2  ;;  %v556_v6 = vmul.f32 %v1153_v62, %v539_v4 }
 0x33e   :  { %565 = vst.msk [vmem:[%s1568_s10 + $0x8] sm:$0xff] %vm37_vm4, %v557_v5 }
 0x33f   :  { %564 = vst.msk [vmem:[%s1568_s10] sm:$0xff] %vm37_vm4, %v556_v6  ;;  %v1124_v9 = vpack.c.bf16 %v557_v5, %v556_v6 }
 0x341   :  { %v1025_v11 = vpop.f32.mrb[6].mxu0  ;;  %1125 = vmatprep.subr.bf16.mxu0 %v1124_v9 }
 0x342   :  { %v513_v12 = vadd.f32 %v1025_v11, %v343_v8  ;;  %v489_v14 = vpop.f32.mrb[7].mxu0  ;;  %1127 = vmatpush3.bf16.msra.mxu0 %v1124_v9 }
 0x343   :  { %v512_v15 = vadd.f32 %v489_v14, %v342_v10  ;;  %v542_v16 = vld [vmem:[#allocation2 + $0x18] sm:$0xff] }
 0x344   :  { %522 = vst.msk [vmem:[#allocation2 + $0x28] sm:$0xff] %vm37_vm4, %v513_v12  ;;  %v541_v17 = vld [vmem:[#allocation2 + $0x10] sm:$0xff]  ;;  %v559_v18 = vmul.f32 %v1153_v62, %v542_v16 }
 0x345   :  { %521 = vst.msk [vmem:[#allocation2 + $0x20] sm:$0xff] %vm37_vm4, %v512_v15  ;;  %v558_v7 = vmul.f32 %v1153_v62, %v541_v17 }
 0x346   :  { %567 = vst.msk [vmem:[%s1568_s10 + $0x18] sm:$0xff] %vm37_vm4, %v559_v18 }
 0x347   :  { %566 = vst.msk [vmem:[%s1568_s10 + $0x10] sm:$0xff] %vm37_vm4, %v558_v7  ;;  %v1128_v20 = vpack.c.bf16 %v559_v18, %v558_v7 }
 0x349   :  { %v1028_v22 = vpop.f32.mrb[8].mxu0  ;;  %1129 = vmatprep.subr.bf16.mxu0 %v1128_v20 }
 0x34a   :  { %v515_v23 = vadd.f32 %v1028_v22, %v345_v19  ;;  %v499_v24 = vpop.f32.mrb[9].mxu0  ;;  %1131 = vmatpush3.bf16.msra.mxu0 %v1128_v20 }
 0x34b   :  { %v514_v25 = vadd.f32 %v499_v24, %v344_v21  ;;  %v544_v26 = vld [vmem:[#allocation2 + $0x28] sm:$0xff] }
 0x34c   :  { %524 = vst.msk [vmem:[#allocation2 + $0x38] sm:$0xff] %vm37_vm4, %v515_v23  ;;  %v543_v27 = vld [vmem:[#allocation2 + $0x20] sm:$0xff]  ;;  %v561_v28 = vmul.f32 %v1153_v62, %v544_v26 }
 0x34d   :  { %523 = vst.msk [vmem:[#allocation2 + $0x30] sm:$0xff] %vm37_vm4, %v514_v25  ;;  %v560_v29 = vmul.f32 %v1153_v62, %v543_v27 }
 0x34e   :  { %569 = vst.msk [vmem:[%s1568_s10 + $0x28] sm:$0xff] %vm37_vm4, %v561_v28 }
 0x34f   :  { %568 = vst.msk [vmem:[%s1568_s10 + $0x20] sm:$0xff] %vm37_vm4, %v560_v29  ;;  %v1132_v30 = vpack.c.bf16 %v561_v28, %v560_v29 }
 0x351   :  { %1133 = vmatprep.subr.bf16.mxu0 %v1132_v30 }
 0x352   :  { %1135 = vmatpush3.bf16.msra.mxu0 %v1132_v30 }
 0x353   :  { %v546_v31 = vld [vmem:[#allocation2 + $0x38] sm:$0xff] }
 0x354   :  { %v545_v32 = vld [vmem:[#allocation2 + $0x30] sm:$0xff]  ;;  %v563_v33 = vmul.f32 %v1153_v62, %v546_v31 }
 0x355   :  { %v562_v34 = vmul.f32 %v1153_v62, %v545_v32 }
 0x356   :  { %571 = vst.msk [vmem:[%s1568_s10 + $0x38] sm:$0xff] %vm37_vm4, %v563_v33 }
 0x357   :  { %570 = vst.msk [vmem:[%s1568_s10 + $0x30] sm:$0xff] %vm37_vm4, %v562_v34  ;;  %v1136_v35 = vpack.c.bf16 %v563_v33, %v562_v34  ;;  %s853_s10 = sshll.u32 %s1181_s7, 4  ;;  %s854_s10 = int_to_ptr.vmem [resolvable:$true] %s853_s10 }
 0x358   :  { %s1154_s18 = scalar_lea.vmem %s854_s10, 128  ;;  %p1159_p1 = scmp.lt.s32.totalorder %s854_s10, %s854_s10 }
 0x359   :  { %1137 = vmatprep.subr.bf16.mxu0 %v1136_v35  ;;  %p1155_p0 = scmp.ne.s32.totalorder %s854_s10, %s1154_s18  ;;  %p1160_p2 = scmp.lt.s32.totalorder %s1154_s18, %s1154_s18 }
 0x35a   :  { %1139 = vmatpush3.bf16.msra.mxu0 %v1136_v35 }
 0x35b   :  { %p1161_p3 = por %p1160_p2, %p1159_p1 }
 0x35d   :  { %1046 = vmatmul.mubr.msk.f32.vlgmr.msra.gmra.mrb[10].mxu0 %vm261_vm3, %v573_v36  ;;  %p1162_p4 = pnand %p1161_p3, %p1155_p0 }
 0x35e   :  { %1048 = vmatprep.mubr.msk.f32.mxu0 %vm261_vm3, %v574_v37 }
 0x361   :  { %1049 = vmatmul.mubr.msk.f32.gmra.mrb[12].mxu0 %vm261_vm3, %v575_v38 }
 0x430   :  { %v1047_v42 = vpop.f32.mrb[10].mxu0 }
 0x431   :  { %v654_v43 = vpop.f32.mrb[11].mxu0 }
 0x432   :  { %v1140_v44 = vpack.c.bf16 %v1047_v42, %v654_v43 }
 0x434   :  { %v1050_v46 = vpop.f32.mrb[12].mxu0  ;;  %1141 = vmatprep.subr.bf16.mxu1 %v1140_v44 }
 0x435   :  { %v664_v47 = vpop.f32.mrb[13].mxu0  ;;  %1143 = vmatpush3.bf16.msra.mxu1 %v1140_v44 }
 0x436   :  { %v1144_v48 = vpack.c.bf16 %v1050_v46, %v664_v47 }
 0x438   :  { %1145 = vmatprep.subr.bf16.mxu1 %v1144_v48 }
 0x439   :  { %1147 = vmatpush3.bf16.msra.mxu1 %v1144_v48 }
 0x43c   :  { %1060 = vmatmul.mubr.msk.f32.vlgmr.msra.gmra.mrb[4].mxu1 %vm709_vm7, %v694_v39 }
 0x43d   :  { %1062 = vmatprep.mubr.msk.f32.mxu1 %vm709_vm7, %v695_v40 }
 0x440   :  { %1063 = vmatmul.mubr.msk.f32.gmra.mrb[6].mxu1 %vm709_vm7, %v696_v41 }
 0x441   :  { %1065 = vmatprep.mubr.msk.f32.mxu1 %vm709_vm7, %v697_v45 }
 0x444   :  { %1066 = vmatmul.mubr.msk.f32.gmra.mrb[8].mxu1 %vm709_vm7, %v698_v49 }
 0x445   :  { %1068 = vmatprep.mubr.msk.f32.mxu1 %vm709_vm7, %v699_v50 }
 0x448   :  { %1069 = vmatmul.mubr.msk.f32.gmra.mrb[10].mxu1 %vm709_vm7, %v700_v51 }
 0x449   :  { %1165 = shalt.err (!%p1162_p4)
}
 0x44a   :  { %s1166_s21 = scalar_lea.hbm %s1566_s8, 128 }
 0x44b   :  { %p1167_p5 = scmp.ne.s32.totalorder %s1566_s8, %s1166_s21  ;;  %p1170_p6 = scmp.lt.u32.totalorder %s1166_s21, %s1566_s8 }
 0x44d   :  { %p1172_p7 = pnand %p1170_p6, %p1167_p5 }
 0x44f   :  { %1175 = shalt.err (!%p1172_p7)
}
 0x450   :  { %856 = dma.vmem_to_hbm [thread:$0]  %s854_s10, 128, %s1566_s8, [#allocation5]  }
 0x50f   :  { %v1061_v52 = vpop.f32.mrb[4].mxu1 }
 0x510   :  { %840 = vst.msk [vmem:[%s1567_s9 + $0x8] sm:$0xff] %vm37_vm4, %v1061_v52  ;;  %v800_v53 = vpop.f32.mrb[5].mxu1 }
 0x511   :  { %839 = vst.msk [vmem:[%s1567_s9] sm:$0xff] %vm37_vm4, %v800_v53 }
 0x513   :  { %v1064_v54 = vpop.f32.mrb[6].mxu1 }
 0x514   :  { %842 = vst.msk [vmem:[%s1567_s9 + $0x18] sm:$0xff] %vm37_vm4, %v1064_v54  ;;  %v810_v55 = vpop.f32.mrb[7].mxu1 }
 0x515   :  { %841 = vst.msk [vmem:[%s1567_s9 + $0x10] sm:$0xff] %vm37_vm4, %v810_v55 }
 0x517   :  { %v1067_v56 = vpop.f32.mrb[8].mxu1 }
 0x518   :  { %844 = vst.msk [vmem:[%s1567_s9 + $0x28] sm:$0xff] %vm37_vm4, %v1067_v56  ;;  %v820_v57 = vpop.f32.mrb[9].mxu1 }
 0x519   :  { %843 = vst.msk [vmem:[%s1567_s9 + $0x20] sm:$0xff] %vm37_vm4, %v820_v57 }
 0x51b   :  { %v1070_v58 = vpop.f32.mrb[10].mxu1 }
 0x51c   :  { %846 = vst.msk [vmem:[%s1567_s9 + $0x38] sm:$0xff] %vm37_vm4, %v1070_v58  ;;  %v830_v59 = vpop.f32.mrb[11].mxu1 }
 0x51d   :  { %845 = vst.msk [vmem:[%s1567_s9 + $0x30] sm:$0xff] %vm37_vm4, %v830_v59 }
 0x51e   :  { %1176 = dma.done.wait [#allocation5], 128  }
 0x51f   :  { %1177 = vsyncadd [#allocation5], 4294967168 }
 0x520   :  { %868 = vsyncpa [#allocation5], 1 }

</bundles_post_ra>
